<compile_context>
chip_gen: v5e
topology: v5e:2x2
jax: 0.10.0
libtpu: 0.0.40
codegen_flags: <defaults>
</compile_context>

<pallas_src>
import jax
import jax.numpy as jnp
from jax.experimental import pallas as pl
from jax.experimental.pallas import tpu as pltpu


def _round_up(x, m):
    return (x + m - 1) // m * m


def ngram_kernel(idx_ref, t_ref, w2_ref, b2_ref, o_ref):
    """One batch tile.

    idx_ref: (tile_b, C) int32   -- context word indices
    t_ref:   (C, Vp, Hp) bf16    -- folded emb_table @ w1 (b1 folded into c=0)
    w2_ref:  (Hp, Vp) bf16       -- second Linear weight (lane-padded vocab)
    b2_ref:  (1, Vp) f32         -- second Linear bias; padded lanes = -1e30
    o_ref:   (tile_b, Vp) f32    -- log-probabilities (lane-dense store)
    """
    tile_b, ctx = idx_ref.shape
    _, vp, hp = t_ref.shape

    # Lane iota, reused for every context position's one-hot.
    lane = jax.lax.broadcasted_iota(jnp.int32, (tile_b, vp), 1)

    # Fused embedding gather + first Linear (pre-folded into T):
    #   h = sum_c one_hot(idx_c) @ T_c      (bf16 MXU, f32 accumulation)
    h = jnp.zeros((tile_b, hp), jnp.float32)
    for c in range(ctx):  # ctx is a tiny static constant (2) -> unrolled
        one_hot = (lane == idx_ref[:, c:c + 1]).astype(jnp.bfloat16)
        h = h + jnp.dot(one_hot, t_ref[c], preferred_element_type=jnp.float32)
    h = jnp.maximum(h, 0.0)  # ReLU (b1 already folded into T_0)

    # Second Linear: clean K=Hp bf16 matmul with f32 accumulation.
    logits = jnp.dot(h.astype(jnp.bfloat16), w2_ref[...],
                     preferred_element_type=jnp.float32)
    logits = logits + b2_ref[...]  # padded vocab lanes pick up -1e30 here

    # Numerically stable log_softmax over the lane-padded vocab axis (f32).
    m = jnp.max(logits, axis=-1, keepdims=True)
    shifted = logits - m
    lse = jnp.log(jnp.sum(jnp.exp(shifted), axis=-1, keepdims=True))
    o_ref[...] = shifted - lse


def fold_params(emb_table, w1, b1, w2, b2, context_size):
    """Pre-fold Embedding + Linear1 into per-context-position tables.

    Done once per parameter set (offline / outside the hot loop).
    """
    V, E = emb_table.shape
    H = w1.shape[1]
    Vp = _round_up(V, 128)
    Hp = _round_up(H, 128)

    # T[c] = emb_table @ w1[c*E:(c+1)*E]   (f32), with b1 folded into T[0].
    w1_split = w1.astype(jnp.float32).reshape(context_size, E, H)
    t = jnp.einsum("ve,ceh->cvh", emb_table.astype(jnp.float32), w1_split)
    t = t.at[0].add(b1.reshape(1, H).astype(jnp.float32))
    t = jnp.pad(t, ((0, 0), (0, Vp - V), (0, Hp - H)))  # unused rows/cols = 0

    w2p = jnp.pad(w2.astype(jnp.float32), ((0, Hp - H), (0, Vp - V)))
    # Padded vocab lanes get -1e30 (kept f32!) so they vanish from the softmax.
    b2p = jnp.pad(b2.reshape(1, V).astype(jnp.float32), ((0, 0), (0, Vp - V)),
                  constant_values=-1e30)

    return dict(
        t=t.astype(jnp.bfloat16),      # (C, Vp, Hp)
        w2=w2p.astype(jnp.bfloat16),   # (Hp, Vp)
        b2=b2p,                        # (1, Vp) f32
        vocab_size=V,
        context_size=context_size,
        hidden_padded=Hp,
        vocab_padded=Vp,
    )


def _choose_tile_b(batch, tile_b):
    tile_b = max(8, min(tile_b, _round_up(batch, 8)))
    # Keep >= 2 grid steps whenever there's enough work so both of v7x's
    # TensorCores receive batch tiles (harmless on single-TC v5e / v6e).
    if batch >= 16:
        tile_b = min(tile_b, max(8, _round_up((batch + 1) // 2, 8)))
    return tile_b


def ngram_forward(inputs, folded, *, tile_b=512):
    """inputs: (B, C) or (C,) int32 indices -> (B, V) / (1, V) f32 log-probs."""
    if inputs.ndim == 1:
        inputs = inputs[None, :]
    B, C = inputs.shape
    assert C == folded["context_size"]
    V = folded["vocab_size"]
    Vp = folded["vocab_padded"]
    Hp = folded["hidden_padded"]

    tile_b = _choose_tile_b(B, tile_b)
    Bp = _round_up(B, tile_b)
    if Bp != B:
        inputs = jnp.pad(inputs, ((0, Bp - B), (0, 0)))  # index 0 is valid

    grid = (Bp // tile_b,)
    out = pl.pallas_call(
        ngram_kernel,
        out_shape=jax.ShapeDtypeStruct((Bp, Vp), jnp.float32),
        grid=grid,
        in_specs=[
            pl.BlockSpec((tile_b, C), lambda i: (i, 0)),      # indices per tile
            pl.BlockSpec((C, Vp, Hp), lambda i: (0, 0, 0)),   # folded emb@w1 (resident)
            pl.BlockSpec((Hp, Vp), lambda i: (0, 0)),         # w2 (resident)
            pl.BlockSpec((1, Vp), lambda i: (0, 0)),          # b2 (resident)
        ],
        out_specs=pl.BlockSpec((tile_b, Vp), lambda i: (i, 0)),
        compiler_params=pltpu.CompilerParams(
            dimension_semantics=("parallel",),  # megacore sharding on v7x
        ),
    )(inputs.astype(jnp.int32), folded["t"], folded["w2"], folded["b2"])

    return out[:B, :V]


def ngram_reference(inputs, emb_table, w1, b1, w2, b2):
    """Pure f32 JAX reference matching the PyTorch forward semantics."""
    if inputs.ndim == 1:
        inputs = inputs[None, :]
    x = emb_table[inputs].reshape(inputs.shape[0], -1)
    h = jnp.maximum(jnp.dot(x, w1) + b1.reshape(1, -1), 0.0)
    logits = jnp.dot(h, w2) + b2.reshape(1, -1)
    return jax.nn.log_softmax(logits, axis=-1)


if __name__ == "__main__":
    # Vocab from the tutorial's raw text, exactly like the PyTorch script.
    raw_text = (
        "We are about to study the idea of a computational process.\n"
        "Computational processes are abstract beings that inhabit computers.\n"
        "As they evolve, processes manipulate other abstract things called data.\n"
        "The evolution of a process is directed by a pattern of rules\n"
        "called a program. People create programs to direct processes. In effect,\n"
        "we conjure the spirits of the computer with our spells."
    ).split()
    vocab = sorted(set(raw_text))
    VOCAB_SIZE = len(vocab)
    EMBEDDING_DIM = 10
    CONTEXT_SIZE = 2
    HIDDEN = 128

    key = jax.random.PRNGKey(0)
    k_emb, k_w1, k_b1, k_w2, k_b2, k_in = jax.random.split(key, 6)

    # Deterministic synthetic parameters (shapes follow the module __init__).
    emb_table = jax.random.normal(k_emb, (VOCAB_SIZE, EMBEDDING_DIM), jnp.float32)
    w1 = jax.random.normal(k_w1, (CONTEXT_SIZE * EMBEDDING_DIM, HIDDEN), jnp.float32) * 0.1
    b1 = jax.random.normal(k_b1, (1, HIDDEN), jnp.float32) * 0.1
    w2 = jax.random.normal(k_w2, (HIDDEN, VOCAB_SIZE), jnp.float32) * 0.1
    b2 = jax.random.normal(k_b2, (1, VOCAB_SIZE), jnp.float32) * 0.1

    # One-time offline fold of Embedding + Linear1 (+ b1) into T tables.
    folded = fold_params(emb_table, w1, b1, w2, b2, CONTEXT_SIZE)

    # A batch of n-gram contexts (exercises the grid: tile_b=128 -> 2 tiles) ...
    B = 256
    batch_inputs = jax.random.randint(k_in, (B, CONTEXT_SIZE), 0, VOCAB_SIZE, jnp.int32)
    # ... plus a single context (original PyTorch calling convention).
    single_inputs = batch_inputs[0]

    out_batch = jax.block_until_ready(ngram_forward(batch_inputs, folded))
    out_single = jax.block_until_ready(ngram_forward(single_inputs, folded))

    ref_batch = ngram_reference(batch_inputs, emb_table, w1, b1, w2, b2)
    ref_single = ngram_reference(single_inputs, emb_table, w1, b1, w2, b2)

    assert out_batch.shape == (B, VOCAB_SIZE)
    assert out_single.shape == (1, VOCAB_SIZE)
    assert jnp.allclose(out_batch, ref_batch, atol=2e-2), "batched mismatch vs f32 reference"
    assert jnp.allclose(out_single, ref_single, atol=2e-2), "single mismatch vs f32 reference"
    # log-probabilities must exponentiate to a proper distribution
    assert jnp.allclose(jnp.exp(out_batch).sum(axis=-1), 1.0, atol=1e-3)

    print("KERNEL_OK")
</pallas_src>

<mosaic_0001>
module attributes {stable_mosaic.version = 11 : i64} {
  func.func @ngram_kernel(%arg0: i32, %arg1: memref<128x2xi32, #tpu.memory_space<vmem>>, %arg2: memref<2x128x128xbf16, #tpu.memory_space<vmem>>, %arg3: memref<128x128xbf16, #tpu.memory_space<vmem>>, %arg4: memref<1x128xf32, #tpu.memory_space<vmem>>, %arg5: memref<128x128xf32, #tpu.memory_space<vmem>>) attributes {dimension_semantics = [#tpu.dimension_semantics<parallel>], iteration_bounds = array<i64: 2>, scalar_prefetch = 0 : i64, scratch_operands = 0 : i64, tpu.core_type = #tpu.core_type<tc>, window_params = [{transform_indices = @transform_0, window_bounds = array<i64: 128, 2>}, {pipeline_mode = #tpu.pipeline_mode<synchronous>, transform_indices = @transform_1, window_bounds = array<i64: 2, 128, 128>}, {pipeline_mode = #tpu.pipeline_mode<synchronous>, transform_indices = @transform_2, window_bounds = array<i64: 128, 128>}, {pipeline_mode = #tpu.pipeline_mode<synchronous>, transform_indices = @transform_3, window_bounds = array<i64: 1, 128>}, {transform_indices = @transform_4, window_bounds = array<i64: 128, 128>}]} {
    %0 = tpu.iota {dimensions = array<i32: 1>} : vector<128x128xi32>
    %cst = arith.constant 0.000000e+00 : f32
    %1 = vector.broadcast %cst : f32 to vector<128x128xf32>
    %c0 = arith.constant 0 : index
    %c0_0 = arith.constant 0 : index
    %2 = vector.load %arg1[%c0, %c0_0] : memref<128x2xi32, #tpu.memory_space<vmem>>, vector<128x1xi32>
    %3 = vector.broadcast %2 : vector<128x1xi32> to vector<128x128xi32>
    %4 = arith.cmpi eq, %0, %3 : vector<128x128xi32>
    %5 = arith.extui %4 : vector<128x128xi1> to vector<128x128xi32>
    %6 = arith.sitofp %5 : vector<128x128xi32> to vector<128x128xf32>
    %7 = arith.truncf %6 : vector<128x128xf32> to vector<128x128xbf16>
    %c0_1 = arith.constant 0 : index
    %c0_2 = arith.constant 0 : index
    %c0_3 = arith.constant 0 : index
    %8 = vector.load %arg2[%c0_1, %c0_2, %c0_3] : memref<2x128x128xbf16, #tpu.memory_space<vmem>>, vector<1x128x128xbf16>
    %9 = vector.shape_cast %8 : vector<1x128x128xbf16> to vector<128x128xbf16>
    %cst_4 = arith.constant dense<0.000000e+00> : vector<128x128xf32>
    %10 = tpu.matmul %7, %9, %cst_4 {dimension_numbers = #tpu.dot_dimension_numbers<[1], [0], [0], [1], [0, 0, 1, 1], [], []>} : vector<128x128xbf16>, vector<128x128xbf16>, vector<128x128xf32> -> vector<128x128xf32>
    %11 = arith.addf %1, %10 : vector<128x128xf32>
    %c0_5 = arith.constant 0 : index
    %c1 = arith.constant 1 : index
    %12 = vector.load %arg1[%c0_5, %c1] : memref<128x2xi32, #tpu.memory_space<vmem>>, vector<128x1xi32>
    %13 = vector.broadcast %12 : vector<128x1xi32> to vector<128x128xi32>
    %14 = arith.cmpi eq, %0, %13 : vector<128x128xi32>
    %15 = arith.extui %14 : vector<128x128xi1> to vector<128x128xi32>
    %16 = arith.sitofp %15 : vector<128x128xi32> to vector<128x128xf32>
    %17 = arith.truncf %16 : vector<128x128xf32> to vector<128x128xbf16>
    %c1_6 = arith.constant 1 : index
    %c0_7 = arith.constant 0 : index
    %c0_8 = arith.constant 0 : index
    %18 = vector.load %arg2[%c1_6, %c0_7, %c0_8] : memref<2x128x128xbf16, #tpu.memory_space<vmem>>, vector<1x128x128xbf16>
    %19 = vector.shape_cast %18 : vector<1x128x128xbf16> to vector<128x128xbf16>
    %cst_9 = arith.constant dense<0.000000e+00> : vector<128x128xf32>
    %20 = tpu.matmul %17, %19, %cst_9 {dimension_numbers = #tpu.dot_dimension_numbers<[1], [0], [0], [1], [0, 0, 1, 1], [], []>} : vector<128x128xbf16>, vector<128x128xbf16>, vector<128x128xf32> -> vector<128x128xf32>
    %21 = arith.addf %11, %20 : vector<128x128xf32>
    %cst_10 = arith.constant 0.000000e+00 : f32
    %22 = vector.broadcast %cst_10 : f32 to vector<128x128xf32>
    %23 = arith.maximumf %21, %22 : vector<128x128xf32>
    %24 = arith.truncf %23 : vector<128x128xf32> to vector<128x128xbf16>
    %c0_11 = arith.constant 0 : index
    %c0_12 = arith.constant 0 : index
    %25 = vector.load %arg3[%c0_11, %c0_12] : memref<128x128xbf16, #tpu.memory_space<vmem>>, vector<128x128xbf16>
    %cst_13 = arith.constant dense<0.000000e+00> : vector<128x128xf32>
    %26 = tpu.matmul %24, %25, %cst_13 {dimension_numbers = #tpu.dot_dimension_numbers<[1], [0], [0], [1], [0, 0, 1, 1], [], []>} : vector<128x128xbf16>, vector<128x128xbf16>, vector<128x128xf32> -> vector<128x128xf32>
    %c0_14 = arith.constant 0 : index
    %c0_15 = arith.constant 0 : index
    %27 = vector.load %arg4[%c0_14, %c0_15] : memref<1x128xf32, #tpu.memory_space<vmem>>, vector<1x128xf32>
    %28 = vector.broadcast %27 : vector<1x128xf32> to vector<128x128xf32>
    %29 = arith.addf %26, %28 : vector<128x128xf32>
    %cst_16 = arith.constant dense<0xFF800000> : vector<128xf32>
    %30 = vector.multi_reduction <maximumf>, %29, %cst_16 [1] : vector<128x128xf32> to vector<128xf32>
    %31 = vector.shape_cast %30 : vector<128xf32> to vector<128x1xf32>
    %32 = vector.broadcast %31 : vector<128x1xf32> to vector<128x128xf32>
    %33 = arith.subf %29, %32 : vector<128x128xf32>
    %34 = math.exp %33 : vector<128x128xf32>
    %cst_17 = arith.constant dense<0.000000e+00> : vector<128xf32>
    %35 = vector.multi_reduction <add>, %34, %cst_17 [1] : vector<128x128xf32> to vector<128xf32>
    %36 = vector.shape_cast %35 : vector<128xf32> to vector<128x1xf32>
    %37 = math.log %36 : vector<128x1xf32>
    %38 = vector.broadcast %37 : vector<128x1xf32> to vector<128x128xf32>
    %39 = arith.subf %33, %38 : vector<128x128xf32>
    %c0_18 = arith.constant 0 : index
    %c0_19 = arith.constant 0 : index
    %40 = vector.load %arg5[%c0_18, %c0_19] : memref<128x128xf32, #tpu.memory_space<vmem>>, vector<128x128xf32>
    tpu.vector_store %arg5[%c0_18, %c0_19], %39 {strides = array<i32>} : memref<128x128xf32, #tpu.memory_space<vmem>>, vector<128x128xf32>,
    return
  }
  func.func @transform_0(%arg0: i32) -> (i32, i32) {
    %c0_i32 = arith.constant 0 : i32
    %c0_i32_0 = arith.constant 0 : i32
    return %arg0, %c0_i32 : i32, i32
  }
  func.func @transform_1(%arg0: i32) -> (i32, i32, i32) {
    %c0_i32 = arith.constant 0 : i32
    %c0_i32_0 = arith.constant 0 : i32
    %c0_i32_1 = arith.constant 0 : i32
    %c0_i32_2 = arith.constant 0 : i32
    return %c0_i32, %c0_i32_0, %c0_i32_1 : i32, i32, i32
  }
  func.func @transform_2(%arg0: i32) -> (i32, i32) {
    %c0_i32 = arith.constant 0 : i32
    %c0_i32_0 = arith.constant 0 : i32
    %c0_i32_1 = arith.constant 0 : i32
    return %c0_i32, %c0_i32_0 : i32, i32
  }
  func.func @transform_3(%arg0: i32) -> (i32, i32) {
    %c0_i32 = arith.constant 0 : i32
    %c0_i32_0 = arith.constant 0 : i32
    %c0_i32_1 = arith.constant 0 : i32
    return %c0_i32, %c0_i32_0 : i32, i32
  }
  func.func @transform_4(%arg0: i32) -> (i32, i32) {
    %c0_i32 = arith.constant 0 : i32
    %c0_i32_0 = arith.constant 0 : i32
    return %arg0, %c0_i32 : i32, i32
  }
}

</mosaic_0001>

<bundles_post_ra>
// kernel: tpu_custom_call.1
= control target key start
LH: loop header
LB: loop body
LE: loop exit
PB: predicated region body
PF: predicated region fallthrough
CT: control target
= control target key end

     0   :  { %9 = vsyncpa [#allocation3], 0  ;;  %s1875_s0 = inlined_call_operand.vmem [shape: s32[256,2], index: 0, kind: input, shape index: {}]   ;;  %s1876_s1 = inlined_call_operand.vmem [shape: bf16[2,128,128], index: 1, kind: input, shape index: {}]   ;;  %s1877_s2 = inlined_call_operand.vmem [shape: bf16[128,128], index: 2, kind: input, shape index: {}]   ;;  %s1878_s3 = inlined_call_operand.vmem [shape: f32[1,128], index: 3, kind: input, shape index: {}]   ;;  %s1879_s4 = inlined_call_operand.hbm [shape: f32[256,128], index: 4, kind: output, shape index: {}]  }
   0x1   :  { %11 = vsyncpa [#allocation3 + $0x1], 0  ;;  %s1504_s15 = smov 0   ;;  %s1506_s16 = smov 0  }
   0x2   :  { %s1508_s17 = smov 0   ;;  %s1510_s18 = smov 0  }
   0x3 LB: > { %s1525_s19 = sadd.s32 4294967295, %s1472_s18   ;;  %s1047_s20 = sadd.s32 4294967294, %s1472_s18   ;;  %s1472_s18 = sphi %s1510_s18, %s1885_s18   ;;  %s1468_s17 = sphi %s1508_s17, %s1884_s17   ;;  %s1464_s16 = sphi %s1506_s16, %s1883_s16   ;;  %s1460_s15 = sphi %s1504_s15, %s1882_s15  }
   0x4   : > { %s1529_s21 = sadd.s32 1, %s1472_s18   ;;  %s113_s22 = sadd.s32 1, %s1468_s17 }
   0x5   : > { %s110_s23 = ssub.s32 %s1472_s18, %s1529_s21  ;;  %p123_p0 = scmp.ne.s32.totalorder %s1468_s17, %s1464_s16 }
   0x6   : > { %p111_p1 = scmp.eq.s32.totalorder %s110_s23, 0  ;;  %p124_p2 = scmp.eq.s32.totalorder %s1525_s19, 1 }
   0x7   : > { %p129_p3 = scmp.ne.s32.totalorder %s1464_s16, %s1460_s15  ;;  %p130_p4 = scmp.eq.s32.totalorder %s1047_s20, 1 }
   0x8   : > { %s1540_s24 = scalar_select %p111_p1, %s1468_s17, %s113_s22  }
   0x9   : > { %p1542_p5 = por %p124_p2, %p123_p0  ;;  %p1546_p6 = por %p130_p4, %p129_p3 }
   0xa   : > { %p1050_p7 = scmp.ge.s32.totalorder %s1472_s18, 1  ;;  %p166_p8 = scmp.lt.s32.totalorder %s1472_s18, 3 }
   0xc   : > { %p167_p9 = pnand %p1050_p7, %p166_p8 }
   0xd   : > { %s1052_s27 = sshll.u32 (!%p167_p9), %s1525_s19, 4  ;;  %s189_s6 = sand.u32 (!%p167_p9), 1, %s1464_s16  }
   0xe   : > { %170 = sbr.rel (%p167_p9) target bundleno = 780 (0x30c), region = 36  ;;  %p193_p10 = scmp.lt.s32.totalorder (!%p167_p9), %s1052_s27, 31 }
   0xf   : > { %s1051_s7 = sshll.u32 (!%p167_p9), %s189_s6, 7  ;;  %s1259_s9 = sshll.u32 (!%p167_p9), %s1525_s19, 7 }
  0x10   : > { %s1808_s8 = scalar_lea.vmem (!%p167_p9), [#allocation2], %s1051_s7  ;;  %s981_s12 = scalar_lea.hbm (!%p167_p9), %s1879_s4, %s1259_s9 }
  0x11   : > { %s982_s13 = sshll.u32 (!%p167_p9), %s1808_s8, 4  ;;  %s984_s14 = sshll.u32 (!%p167_p9), %s981_s12, 4  ;;  %s983_s13 = int_to_ptr.vmem [resolvable:$true] %s982_s13  ;;  %s985_s14 = int_to_ptr.hbm [resolvable:$true] %s984_s14 }
  0x12   : > { %s970_s19 = scalar_lea.sflag (!%p167_p9), [#allocation3], %s189_s6  ;;  %s1424_s20 = sshra.s32 (!%p167_p9), %s985_s14, 4  ;;  %s1425_s20 = int_to_ptr.hbm [resolvable:$true] %s1424_s20 }
  0x13   : > { %v1474_v0 = vmov 1   ;;  %v1475_v1 = vmov 0   ;;  %s1887_s27 = smov (!%p193_p10, %s1052_s27), 31  ;;  %v1250_v15 = vld [vmem:[%s1876_s1 + $0x78] sm:$0xff]  ;;  %v1249_v17 = vld [vmem:[%s1876_s1 + $0x70] sm:$0xff]  ;;  %v1248_v20 = vld [vmem:[%s1876_s1 + $0x68] sm:$0xff]  ;;  %v199_v38 = vlaneseq  ;;  %p1431_p0 = scmp.lt.s32.totalorder %s1425_s20, %s1879_s4 }
  0x14   : > { %1329 = vset.pattern.permute.xlu1 %v1474_v0  ;;  %1330 = vset.pattern.permute.xlu2 %v1475_v1  ;;  %s1053_s28 = sshll.u32 %s1887_s27, 3  ;;  %v1242_v16 = vld [vmem:[%s1876_s1 + $0x38] sm:$0xff]  ;;  %v1241_v18 = vld [vmem:[%s1876_s1 + $0x30] sm:$0xff]  ;;  %v1240_v21 = vld [vmem:[%s1876_s1 + $0x28] sm:$0xff]  ;;  %v1476_v44 = vmov 1.0|1.0  }
  0x15   : > { %1328 = vset.pattern.permute.xlu0 %v1475_v1  ;;  %s1559_s5 = scalar_lea.vmem %s1875_s0, %s1053_s28  ;;  %506 = vmatpush.bf16.msra.mxu0 %v1250_v15  ;;  %v1247_v22 = vld [vmem:[%s1876_s1 + $0x60] sm:$0xff]  ;;  %v1246_v24 = vld [vmem:[%s1876_s1 + $0x58] sm:$0xff]  ;;  %v1245_v26 = vld [vmem:[%s1876_s1 + $0x50] sm:$0xff]  ;;  %v1639_v40 = vand.u32 127, %v199_v38  ;;  %s1426_s22 = scalar_lea.hbm %s1425_s20, 128 }
  0x16   : > { %v203_v2 = vld [vmem:[%s1559_s5 + $0x10] sm:$0xff]  ;;  %v201_v3 = vld [vmem:[%s1559_s5] sm:$0xff]  ;;  %v204_v4 = vld [vmem:[%s1559_s5 + $0x18] sm:$0xff]  ;;  %603 = vmatpush.bf16.msra.mxu1 %v1242_v16  ;;  %1260 = vmatpush.bf16.msra.mxu3 %v1250_v15  ;;  %p1427_p11 = scmp.ne.s32.totalorder %s1425_s20, %s1426_s22  ;;  %s1430_s28 = scalar_lea.hbm %s1879_s4, 256 }
  0x17   : > { %224 = vperm.xlu2 %1330, %v203_v2   ;;  %338 = vperm.xlu1 %1329, %v201_v3   ;;  %v202_v5 = vld [vmem:[%s1559_s5 + $0x8] sm:$0xff]  ;;  %v213_v6 = vld [vmem:[%s1559_s5 + $0x60] sm:$0xff]  ;;  %v207_v10 = vld [vmem:[%s1559_s5 + $0x30] sm:$0xff]  ;;  %p1432_p1 = scmp.lt.s32.totalorder %s1430_s28, %s1426_s22 }
  0x18   : > { %218 = vperm.xlu0 %1328, %v201_v3   ;;  %v214_v7 = vld [vmem:[%s1559_s5 + $0x68] sm:$0xff]  ;;  %v205_v8 = vld [vmem:[%s1559_s5 + $0x20] sm:$0xff]  ;;  %v215_v11 = vld [vmem:[%s1559_s5 + $0x70] sm:$0xff]  ;;  %p1428_p12 = pnand %p1427_p11, %p1542_p5 }
  0x19   : > { %v206_v9 = vld [vmem:[%s1559_s5 + $0x28] sm:$0xff]  ;;  %v216_v12 = vld [vmem:[%s1559_s5 + $0x78] sm:$0xff]  ;;  %v209_v14 = vld [vmem:[%s1559_s5 + $0x40] sm:$0xff]  ;;  %507 = vmatpush.bf16.msra.mxu0 %v1249_v17  ;;  %p1433_p2 = por %p1432_p1, %p1431_p0 }
  0x1a   : > { %v208_v13 = vld [vmem:[%s1559_s5 + $0x38] sm:$0xff]  ;;  %v210_v19 = vld [vmem:[%s1559_s5 + $0x48] sm:$0xff]  ;;  %604 = vmatpush.bf16.msra.mxu1 %v1241_v18  ;;  %1261 = vmatpush.bf16.msra.mxu3 %v1249_v17  ;;  %v1239_v23 = vld [vmem:[%s1876_s1 + $0x20] sm:$0xff]  ;;  %p1429_p13 = pneg %p1428_p12 }
  0x1b   : > { %v1238_v25 = vld [vmem:[%s1876_s1 + $0x18] sm:$0xff]  ;;  %v1237_v27 = vld [vmem:[%s1876_s1 + $0x10] sm:$0xff]  ;;  %v1244_v30 = vld [vmem:[%s1876_s1 + $0x48] sm:$0xff] }
  0x1c   : > { %v211_v28 = vld [vmem:[%s1559_s5 + $0x50] sm:$0xff]  ;;  %v212_v29 = vld [vmem:[%s1559_s5 + $0x58] sm:$0xff]  ;;  %v1236_v31 = vld [vmem:[%s1876_s1 + $0x8] sm:$0xff]  ;;  %p1434_p3 = pnand %p1433_p2, %p1429_p13 }
  0x1d   : > { %508 = vmatpush.bf16.msra.mxu0 %v1248_v20  ;;  %v1243_v32 = vld [vmem:[%s1876_s1 + $0x40] sm:$0xff]  ;;  %v1258_v61 = vld [vmem:[%s1877_s2 + $0x38] sm:$0xff]  ;;  %v1257_v63 = vld [vmem:[%s1877_s2 + $0x30] sm:$0xff] }
  0x1e   : > { %605 = vmatpush.bf16.msra.mxu1 %v1240_v21  ;;  %1262 = vmatpush.bf16.msra.mxu3 %v1248_v20  ;;  %v1235_v33 = vld [vmem:[%s1876_s1] sm:$0xff] }
  0x1f   : > { %227 = vperm.xlu2 %1330, %v204_v4   ;;  %341 = vperm.xlu1 %1329, %v202_v5   ;;  %v1255_v3 = vld [vmem:[%s1877_s2 + $0x20] sm:$0xff] }
  0x20   : > { %221 = vperm.xlu0 %1328, %v202_v5   ;;  %744 = vmatpush.bf16.msra.mxu2 %v1258_v61 }
  0x21   : > { %509 = vmatpush.bf16.msra.mxu0 %v1247_v22 }
  0x22   : > { %606 = vmatpush.bf16.msra.mxu1 %v1239_v23  ;;  %1263 = vmatpush.bf16.msra.mxu3 %v1247_v22 }
  0x24   : > { %745 = vmatpush.bf16.msra.mxu2 %v1257_v63 }
  0x25   : > { %510 = vmatpush.bf16.msra.mxu0 %v1246_v24 }
  0x26   : > { %607 = vmatpush.bf16.msra.mxu1 %v1238_v25  ;;  %1264 = vmatpush.bf16.msra.mxu3 %v1246_v24 }
  0x27   : > { %1332 = vset.pattern.permute.xlu2 %v1474_v0  ;;  %347 = vperm.xlu1 %1329, %v204_v4  }
  0x28   : > { %1331 = vset.pattern.permute.xlu0 %v1474_v0  ;;  %374 = vperm.xlu2 %1332, %v213_v6  }
  0x29   : > { %344 = vperm.xlu0 %1331, %v203_v2   ;;  %511 = vmatpush.bf16.msra.mxu0 %v1245_v26 }
  0x2a   : > { %608 = vmatpush.bf16.msra.mxu1 %v1237_v27  ;;  %1265 = vmatpush.bf16.msra.mxu3 %v1245_v26 }
  0x2d   : > { %512 = vmatpush.bf16.msra.mxu0 %v1244_v30 }
  0x2e   : > { %609 = vmatpush.bf16.msra.mxu1 %v1236_v31  ;;  %1266 = vmatpush.bf16.msra.mxu3 %v1244_v30 }
  0x2f   : > { %377 = vperm.xlu1 %1329, %v214_v7  }
  0x30   : > { %1333 = vset.pattern.permute.xlu2 %v1475_v1 }
  0x31   : > { %1334 = vset.pattern.permute.xlu0 %v1475_v1  ;;  %230 = vperm.xlu2 %1333, %v205_v8  }
  0x32   : > { %233 = vperm.xlu0 %1334, %v206_v9   ;;  %513 = vmatpush.bf16.msra.mxu0 %v1243_v32 }
  0x33   : > { %610 = vmatpush.bf16.msra.mxu1 %v1235_v33  ;;  %1267 = vmatpush.bf16.msra.mxu3 %v1243_v32 }
  0x37   : > { %350 = vperm.xlu1 %1329, %v205_v8   ;;  %1268 = vmatpush.bf16.msrb.mxu3 %v1242_v16 }
  0x39   : > { %1335 = vset.pattern.permute.xlu2 %v1474_v0 }
  0x3a   : > { %236 = vperm.xlu0 %1334, %v207_v10   ;;  %353 = vperm.xlu2 %1335, %v206_v9   ;;  %v1254_v9 = vld [vmem:[%s1877_s2 + $0x18] sm:$0xff] }
  0x3b   : > { %1269 = vmatpush.bf16.msrb.mxu3 %v1241_v18 }
  0x3f   : > { %380 = vperm.xlu1 %1329, %v215_v11   ;;  %1270 = vmatpush.bf16.msrb.mxu3 %v1240_v21 }
  0x42   : > { %1337 = vset.pattern.permute.xlu0 %v1474_v0  ;;  %383 = vperm.xlu2 %1335, %v216_v12  }
  0x43   : > { %359 = vperm.xlu0 %1337, %v208_v13   ;;  %1271 = vmatpush.bf16.msrb.mxu3 %v1239_v23 }
  0x47   : > { %1336 = vset.pattern.permute.xlu1 %v1475_v1  ;;  %1272 = vmatpush.bf16.msrb.mxu3 %v1238_v25 }
  0x48   : > { %239 = vperm.xlu1 %1336, %v208_v13  }
  0x4a   : > { %356 = vperm.xlu2 %1335, %v207_v10   ;;  %v1253_v10 = vld [vmem:[%s1877_s2 + $0x10] sm:$0xff] }
  0x4b   : > { %362 = vperm.xlu0 %1337, %v209_v14   ;;  %1273 = vmatpush.bf16.msrb.mxu3 %v1237_v27 }
  0x4f   : > { %1274 = vmatpush.bf16.msrb.mxu3 %v1236_v31 }
  0x50   : > { %254 = vperm.xlu1 %1336, %v213_v6  }
  0x52   : > { %1338 = vset.pattern.permute.xlu2 %v1475_v1 }
  0x53   : > { %1340 = vset.pattern.permute.xlu0 %v1475_v1  ;;  %257 = vperm.xlu2 %1338, %v214_v7  }
  0x54   : > { %263 = vperm.xlu0 %1340, %v216_v12   ;;  %1275 = vmatpush.bf16.msrb.mxu3 %v1235_v33  ;;  %v1251_v12 = vld [vmem:[%s1877_s2] sm:$0xff] }
  0x58   : > { %242 = vperm.xlu1 %1336, %v209_v14  }
  0x5b   : > { %245 = vperm.xlu2 %1338, %v210_v19  }
  0x5c   : > { %1344 = vset.pattern.permute.xlu0 %v1474_v0 }
  0x60   : > { %1339 = vset.pattern.permute.xlu1 %v1474_v0 }
  0x61   : > { %365 = vperm.xlu1 %1339, %v210_v19  }
  0x63   : > { %260 = vperm.xlu2 %1338, %v215_v11   ;;  %v1252_v11 = vld [vmem:[%s1877_s2 + $0x8] sm:$0xff] }
  0x69   : > { %1341 = vset.pattern.permute.xlu1 %v1475_v1  ;;  %v1256_v1 = vld [vmem:[%s1877_s2 + $0x28] sm:$0xff] }
  0x6a   : > { %248 = vperm.xlu1 %1341, %v211_v28   ;;  %746 = vmatpush.bf16.msra.mxu2 %v1256_v1 }
  0x6b   : > { %251 = vperm.xlu2 %1338, %v212_v29  }
  0x6e   : > { %747 = vmatpush.bf16.msra.mxu2 %v1255_v3 }
  0x71   : > { %v225_v34 = vpop.permute.xlu2 %224 }
  0x72   : > { %1342 = vset.pattern.permute.xlu1 %v1474_v0  ;;  %vm267_vm8 = vcmp.eq.s32.totalorder %v1639_v40, %v225_v34  ;;  %748 = vmatpush.bf16.msra.mxu2 %v1254_v9 }
  0x73   : > { %368 = vperm.xlu1 %1342, %v211_v28   ;;  %1343 = vset.pattern.permute.xlu2 %v1474_v0 }
  0x74   : > { %371 = vperm.xlu2 %1343, %v212_v29  }
  0x76   : > { %749 = vmatpush.bf16.msra.mxu2 %v1253_v10 }
  0x79   : > { %v228_v35 = vpop.permute.xlu2 %227 }
  0x7a   : > { %vm268_vm9 = vcmp.eq.s32.totalorder %v1639_v40, %v228_v35  ;;  %750 = vmatpush.bf16.msra.mxu2 %v1252_v11 }
  0x7b   : > { %vm1184_vm14 = vmpackc.low %vm268_vm9, %vm267_vm8 }
  0x7e   : > { %751 = vmatpush.bf16.msra.mxu2 %v1251_v12 }
  0x82   : > { %v375_v36 = vpop.permute.xlu2 %374 }
  0x83   : > { %vm397_vm10 = vcmp.eq.s32.totalorder %v1639_v40, %v375_v36 }
  0x89   : > { %v339_v37 = vpop.permute.xlu1 %338 }
  0x8a   : > { %v219_v39 = vpop.permute.xlu0 %218  ;;  %vm385_vm0 = vcmp.eq.s32.totalorder %v1639_v40, %v339_v37 }
  0x8b   : > { %vm265_vm2 = vcmp.eq.s32.totalorder %v1639_v40, %v219_v39  ;;  %v231_v43 = vpop.permute.xlu2 %230 }
  0x91   : > { %v342_v41 = vpop.permute.xlu1 %341 }
  0x92   : > { %vm386_vm1 = vcmp.eq.s32.totalorder %v1639_v40, %v342_v41  ;;  %v222_v42 = vpop.permute.xlu0 %221 }
  0x93   : > { %vm1134_vm3 = vmpackc.low %vm386_vm1, %vm385_vm0  ;;  %vm266_vm4 = vcmp.eq.s32.totalorder %v1639_v40, %v222_v42  ;;  %vm269_vm1 = vcmp.eq.s32.totalorder %v1639_v40, %v231_v43 }
  0x94   : > { %vm1182_vm5 = vmpackc.low %vm266_vm4, %vm265_vm2  ;;  %1135 = vmatmul.msk.bf16.vlgmr.msra.gmra.mxu0 %vm1134_vm3, %v1476_v44  ;;  %v354_v47 = vpop.permute.xlu2 %353 }
  0x95   : > { %1183 = vmatmul.msk.bf16.vlgmr.msra.gmra.mxu1 %vm1182_vm5, %v1476_v44  ;;  %vm390_vm15 = vcmp.eq.s32.totalorder %v1639_v40, %v354_v47 }
  0x99   : > { %v348_v45 = vpop.permute.xlu1 %347 }
  0x9a   : > { %vm388_vm6 = vcmp.eq.s32.totalorder %v1639_v40, %v348_v45 }
  0x9b   : > { %v345_v46 = vpop.permute.xlu0 %344 }
  0x9c   : > { %vm387_vm7 = vcmp.eq.s32.totalorder %v1639_v40, %v345_v46  ;;  %v384_v50 = vpop.permute.xlu2 %383 }
  0x9d   : > { %vm1136_vm11 = vmpackc.low %vm388_vm6, %vm387_vm7  ;;  %vm400_vm3 = vcmp.eq.s32.totalorder %v1639_v40, %v384_v50 }
  0xa1   : > { %v378_v48 = vpop.permute.xlu1 %377 }
  0xa2   : > { %vm398_vm12 = vcmp.eq.s32.totalorder %v1639_v40, %v378_v48 }
  0xa3   : > { %vm1146_vm13 = vmpackc.low %vm398_vm12, %vm397_vm10 }
  0xa4   : > { %1137 = vmatmul.msk.bf16.gmra.mxu0 %vm1136_vm11, %v1476_v44  ;;  %1147 = vmatmul.msk.bf16.vlgmr.msra.gmra.mxu3 %vm1146_vm13, %v1476_v44  ;;  %v234_v49 = vpop.permute.xlu0 %233  ;;  %v357_v53 = vpop.permute.xlu2 %356 }
  0xa5   : > { %1185 = vmatmul.msk.bf16.gmra.mxu1 %vm1184_vm14, %v1476_v44  ;;  %vm270_vm2 = vcmp.eq.s32.totalorder %v1639_v40, %v234_v49  ;;  %vm391_vm10 = vcmp.eq.s32.totalorder %v1639_v40, %v357_v53  ;;  %1276 = vmatpush.bf16.msra.mxu3 %v1258_v61 }
  0xa6   : > { %vm1186_vm7 = vmpackc.low %vm270_vm2, %vm269_vm1 }
  0xa9   : > { %v351_v51 = vpop.permute.xlu1 %350  ;;  %1277 = vmatpush.bf16.msra.mxu3 %v1257_v63 }
  0xaa   : > { %vm389_vm0 = vcmp.eq.s32.totalorder %v1639_v40, %v351_v51 }
  0xab   : > { %vm1138_vm4 = vmpackc.low %vm390_vm15, %vm389_vm0 }
  0xac   : > { %v237_v52 = vpop.permute.xlu0 %236 }
  0xad   : > { %v258_v57 = vpop.permute.xlu2 %257  ;;  %vm271_vm12 = vcmp.eq.s32.totalorder %v1639_v40, %v237_v52  ;;  %1278 = vmatpush.bf16.msra.mxu3 %v1256_v1 }
  0xae   : > { %vm278_vm11 = vcmp.eq.s32.totalorder %v1639_v40, %v258_v57 }
  0xb1   : > { %v381_v54 = vpop.permute.xlu1 %380  ;;  %1279 = vmatpush.bf16.msra.mxu3 %v1255_v3 }
  0xb2   : > { %vm399_vm5 = vcmp.eq.s32.totalorder %v1639_v40, %v381_v54 }
  0xb3   : > { %vm1148_vm6 = vmpackc.low %vm400_vm3, %vm399_vm5 }
  0xb4   : > { %1139 = vmatmul.msk.bf16.gmra.mxu0 %vm1138_vm4, %v1476_v44  ;;  %1149 = vmatmul.msk.bf16.gmra.mxu3 %vm1148_vm6, %v1476_v44 }
  0xb5   : > { %1187 = vmatmul.msk.bf16.gmra.mxu1 %vm1186_vm7, %v1476_v44  ;;  %v360_v55 = vpop.permute.xlu0 %359  ;;  %v246_v60 = vpop.permute.xlu2 %245  ;;  %1280 = vmatpush.bf16.msra.mxu3 %v1254_v9 }
  0xb6   : > { %vm392_vm8 = vcmp.eq.s32.totalorder %v1639_v40, %v360_v55  ;;  %vm274_vm4 = vcmp.eq.s32.totalorder %v1639_v40, %v246_v60 }
  0xb7   : > { %vm1140_vm13 = vmpackc.low %vm392_vm8, %vm391_vm10 }
  0xb9   : > { %1281 = vmatpush.bf16.msra.mxu3 %v1253_v10 }
  0xba   : > { %v240_v56 = vpop.permute.xlu1 %239 }
  0xbb   : > { %vm272_vm9 = vcmp.eq.s32.totalorder %v1639_v40, %v240_v56 }
  0xbc   : > { %vm1188_vm14 = vmpackc.low %vm272_vm9, %vm271_vm12 }
  0xbd   : > { %v363_v59 = vpop.permute.xlu0 %362  ;;  %v261_v2 = vpop.permute.xlu2 %260  ;;  %1282 = vmatpush.bf16.msra.mxu3 %v1252_v11 }
  0xbe   : > { %vm279_vm1 = vcmp.eq.s32.totalorder %v1639_v40, %v261_v2  ;;  %vm393_vm6 = vcmp.eq.s32.totalorder %v1639_v40, %v363_v59 }
  0xc1   : > { %1283 = vmatpush.bf16.msra.mxu3 %v1251_v12 }
  0xc2   : > { %v255_v58 = vpop.permute.xlu1 %254 }
  0xc3   : > { %vm277_vm15 = vcmp.eq.s32.totalorder %v1639_v40, %v255_v58 }
  0xc4   : > { %vm1194_vm0 = vmpackc.low %vm278_vm11, %vm277_vm15  ;;  %1141 = vmatmul.msk.bf16.gmra.mxu0 %vm1140_vm13, %v1476_v44 }
  0xc5   : > { %1189 = vmatmul.msk.bf16.gmra.mxu1 %vm1188_vm14, %v1476_v44  ;;  %1195 = vmatmul.msk.bf16.vlgmr.msrb.gmra.mxu3 %vm1194_vm0, %v1476_v44  ;;  %v252_v5 = vpop.permute.xlu2 %251 }
  0xc6   : > { %v264_v0 = vpop.permute.xlu0 %263  ;;  %vm276_vm11 = vcmp.eq.s32.totalorder %v1639_v40, %v252_v5 }
  0xc7   : > { %vm280_vm2 = vcmp.eq.s32.totalorder %v1639_v40, %v264_v0 }
  0xc8   : > { %vm1196_vm5 = vmpackc.low %vm280_vm2, %vm279_vm1 }
  0xca   : > { %v243_v62 = vpop.permute.xlu1 %242 }
  0xcb   : > { %vm273_vm3 = vcmp.eq.s32.totalorder %v1639_v40, %v243_v62 }
  0xcc   : > { %vm1190_vm7 = vmpackc.low %vm274_vm4, %vm273_vm3 }
  0xce   : > { %v372_v7 = vpop.permute.xlu2 %371 }
  0xcf   : > { %vm396_vm13 = vcmp.eq.s32.totalorder %v1639_v40, %v372_v7 }
  0xd3   : > { %v366_v4 = vpop.permute.xlu1 %365 }
  0xd4   : > { %vm394_vm8 = vcmp.eq.s32.totalorder %v1639_v40, %v366_v4 }
  0xd5   : > { %vm1142_vm9 = vmpackc.low %vm394_vm8, %vm393_vm6  ;;  %1191 = vmatmul.msk.bf16.gmra.mxu1 %vm1190_vm7, %v1476_v44  ;;  %1197 = vmatmul.msk.bf16.gmra.mxu3 %vm1196_vm5, %v1476_v44 }
  0xd6   : > { %1143 = vmatmul.msk.bf16.gmra.mxu0 %vm1142_vm9, %v1476_v44 }
  0xdc   : > { %v249_v6 = vpop.permute.xlu1 %248 }
  0xdd   : > { %vm275_vm10 = vcmp.eq.s32.totalorder %v1639_v40, %v249_v6 }
  0xde   : > { %vm1192_vm12 = vmpackc.low %vm276_vm11, %vm275_vm10 }
  0xe5   : > { %1193 = vmatmul.msk.bf16.gmra.mxu1 %vm1192_vm12, %v1476_v44  ;;  %v369_v8 = vpop.permute.xlu1 %368 }
  0xe6   : > { %vm395_vm14 = vcmp.eq.s32.totalorder %v1639_v40, %v369_v8 }
  0xe7   : > { %vm1144_vm15 = vmpackc.low %vm396_vm13, %vm395_vm14 }
  0xe8   : > { %1145 = vmatmul.msk.bf16.gmra.mxu0 %vm1144_vm15, %v1476_v44 }
 0x111   : > { %v515_v13 = vpop.f32.mrf.mxu0 }
 0x112   : > { %v612_v14 = vpop.f32.mrf.mxu1 }
 0x113   : > { %v613_v15 = vadd.f32 %v612_v14, %v515_v13 }
 0x115   : > { %v652_v19 = vmax.f32 %v613_v15, 0.0 }
 0x119   : > { %v517_v16 = vpop.f32.mrf.mxu0 }
 0x11a   : > { %v614_v17 = vpop.f32.mrf.mxu1 }
 0x11b   : > { %v615_v18 = vadd.f32 %v614_v17, %v517_v16 }
 0x11d   : > { %v653_v20 = vmax.f32 %v615_v18, 0.0 }
 0x11f   : > { %v668_v21 = vpack.c.bf16 %v653_v20, %v652_v19 }
 0x121   : > { %752 = vmatmul.bf16.vlgmr.msra.gmra.mxu2 %v668_v21  ;;  %v520_v22 = vpop.f32.mrf.mxu0  ;;  %v1345_v21 = vld [vmem:[%s1878_s3] ss:$0 sm:$0xff] }
 0x122   : > { %v617_v23 = vpop.f32.mrf.mxu1 }
 0x123   : > { %v618_v25 = vadd.f32 %v617_v23, %v520_v22 }
 0x125   : > { %v654_v29 = vmax.f32 %v618_v25, 0.0 }
 0x127   : > { %v545_v24 = vpop.f32.mrf.mxu3 }
 0x129   : > { %v522_v26 = vpop.f32.mrf.mxu0 }
 0x12a   : > { %v619_v27 = vpop.f32.mrf.mxu1 }
 0x12b   : > { %v620_v28 = vadd.f32 %v619_v27, %v522_v26 }
 0x12d   : > { %v655_v30 = vmax.f32 %v620_v28, 0.0 }
 0x12f   : > { %v547_v31 = vpop.f32.mrf.mxu3  ;;  %v669_v32 = vpack.c.bf16 %v655_v30, %v654_v29 }
 0x131   : > { %757 = vmatmul.bf16.gmra.mxu2 %v669_v32  ;;  %v525_v33 = vpop.f32.mrf.mxu0 }
 0x132   : > { %v622_v34 = vpop.f32.mrf.mxu1 }
 0x133   : > { %v623_v36 = vadd.f32 %v622_v34, %v525_v33 }
 0x135   : > { %v656_v40 = vmax.f32 %v623_v36, 0.0 }
 0x137   : > { %v550_v35 = vpop.f32.mrf.mxu3 }
 0x139   : > { %v527_v37 = vpop.f32.mrf.mxu0 }
 0x13a   : > { %v624_v38 = vpop.f32.mrf.mxu1 }
 0x13b   : > { %v625_v39 = vadd.f32 %v624_v38, %v527_v37 }
 0x13d   : > { %v657_v41 = vmax.f32 %v625_v39, 0.0 }
 0x13f   : > { %v552_v42 = vpop.f32.mrf.mxu3  ;;  %v670_v43 = vpack.c.bf16 %v657_v41, %v656_v40 }
 0x141   : > { %762 = vmatmul.bf16.gmra.mxu2 %v670_v43  ;;  %v530_v44 = vpop.f32.mrf.mxu0 }
 0x142   : > { %v627_v45 = vpop.f32.mrf.mxu1 }
 0x143   : > { %v628_v47 = vadd.f32 %v627_v45, %v530_v44 }
 0x145   : > { %v658_v51 = vmax.f32 %v628_v47, 0.0 }
 0x148   : > { %v642_v46 = vpop.f32.mrf.mxu3 }
 0x149   : > { %v532_v48 = vpop.f32.mrf.mxu0  ;;  %v643_v53 = vadd.f32 %v642_v46, %v545_v24 }
 0x14a   : > { %v629_v49 = vpop.f32.mrf.mxu1 }
 0x14b   : > { %v630_v50 = vadd.f32 %v629_v49, %v532_v48  ;;  %v664_v58 = vmax.f32 %v643_v53, 0.0 }
 0x14d   : > { %v659_v52 = vmax.f32 %v630_v50, 0.0 }
 0x14f   : > { %v671_v54 = vpack.c.bf16 %v659_v52, %v658_v51 }
 0x150   : > { %v644_v55 = vpop.f32.mrf.mxu3 }
 0x151   : > { %v645_v56 = vadd.f32 %v644_v55, %v547_v31  ;;  %767 = vmatmul.bf16.gmra.mxu2 %v671_v54 }
 0x152   : > { %v632_v57 = vpop.f32.mrf.mxu1 }
 0x153   : > { %v665_v59 = vmax.f32 %v645_v56, 0.0  ;;  %v535_v60 = vpop.f32.mrf.mxu0 }
 0x154   : > { %v633_v63 = vadd.f32 %v632_v57, %v535_v60 }
 0x155   : > { %v674_v61 = vpack.c.bf16 %v665_v59, %v664_v58 }
 0x156   : > { %v660_v3 = vmax.f32 %v633_v63, 0.0 }
 0x157   : > { %782 = vmatmul.bf16.vlgmr.msra.gmra.mxu3 %v674_v61 }
 0x158   : > { %v647_v62 = vpop.f32.mrf.mxu3 }
 0x159   : > { %v648_v5 = vadd.f32 %v647_v62, %v550_v35 }
 0x15a   : > { %v634_v0 = vpop.f32.mrf.mxu1 }
 0x15b   : > { %v537_v1 = vpop.f32.mrf.mxu0  ;;  %v666_v9 = vmax.f32 %v648_v5, 0.0 }
 0x15c   : > { %v635_v2 = vadd.f32 %v634_v0, %v537_v1 }
 0x15e   : > { %v661_v4 = vmax.f32 %v635_v2, 0.0 }
 0x160   : > { %v649_v6 = vpop.f32.mrf.mxu3  ;;  %v672_v7 = vpack.c.bf16 %v661_v4, %v660_v3 }
 0x161   : > { %v650_v8 = vadd.f32 %v649_v6, %v552_v42 }
 0x162   : > { %772 = vmatmul.bf16.gmra.mxu2 %v672_v7  ;;  %v637_v11 = vpop.f32.mrf.mxu1 }
 0x163   : > { %v667_v10 = vmax.f32 %v650_v8, 0.0 }
 0x165   : > { %v540_v12 = vpop.f32.mrf.mxu0  ;;  %v675_v13 = vpack.c.bf16 %v667_v10, %v666_v9 }
 0x166   : > { %v638_v14 = vadd.f32 %v637_v11, %v540_v12 }
 0x167   : > { %787 = vmatmul.bf16.gmra.mxu3 %v675_v13 }
 0x168   : > { %v662_v18 = vmax.f32 %v638_v14, 0.0 }
 0x16a   : > { %v639_v15 = vpop.f32.mrf.mxu1 }
 0x16d   : > { %v542_v16 = vpop.f32.mrf.mxu0 }
 0x16e   : > { %v640_v17 = vadd.f32 %v639_v15, %v542_v16 }
 0x170   : > { %v663_v19 = vmax.f32 %v640_v17, 0.0 }
 0x172   : > { %v673_v20 = vpack.c.bf16 %v663_v19, %v662_v18 }
 0x174   : > { %777 = vmatmul.bf16.gmra.mxu2 %v673_v20 }
 0x1a4   : > { %v753_v22 = vpop.f32.mrf.mxu2 }
 0x1a5   : > { %v754_v23 = vadd.f32 %v1345_v21, %v753_v22 }
 0x1a7   : > { %793 = vmax.xlane.f32.xlu0 %v754_v23 }
 0x1ac   : > { %v755_v24 = vpop.f32.mrf.mxu2 }
 0x1ad   : > { %v756_v25 = vadd.f32 %v1345_v21, %v755_v24 }
 0x1af   : > { %795 = vmax.xlane.f32.xlu1 %v756_v25 }
 0x1b4   : > { %v758_v26 = vpop.f32.mrf.mxu2 }
 0x1b5   : > { %v759_v27 = vadd.f32 %v1345_v21, %v758_v26 }
 0x1b7   : > { %797 = vmax.xlane.f32.xlu2 %v759_v27 }
 0x1bc   : > { %v760_v28 = vpop.f32.mrf.mxu2 }
 0x1bd   : > { %v761_v29 = vadd.f32 %v1345_v21, %v760_v28 }
 0x1bf   : > { %799 = vmax.xlane.f32.xlu2 %v761_v29 }
 0x1c4   : > { %v763_v30 = vpop.f32.mrf.mxu2 }
 0x1c5   : > { %v764_v31 = vadd.f32 %v1345_v21, %v763_v30 }
 0x1c7   : > { %801 = vmax.xlane.f32.xlu0 %v764_v31 }
 0x1cc   : > { %v765_v32 = vpop.f32.mrf.mxu2 }
 0x1cd   : > { %v766_v33 = vadd.f32 %v1345_v21, %v765_v32 }
 0x1cf   : > { %803 = vmax.xlane.f32.xlu1 %v766_v33 }
 0x1d4   : > { %v768_v34 = vpop.f32.mrf.mxu2 }
 0x1d5   : > { %v1722_v40 = vadd.f32 %v1345_v21, %v768_v34 }
 0x1da   : > { %v783_v35 = vpop.f32.mrf.mxu3 }
 0x1db   : > { %v1716_v36 = vadd.f32 %v1345_v21, %v783_v35 }
 0x1dc   : > { %v770_v37 = vpop.f32.mrf.mxu2 }
 0x1dd   : > { %v1718_v38 = vadd.f32 %v1345_v21, %v770_v37  ;;  %817 = vmax.xlane.f32.xlu2 %v1716_v36 }
 0x1df   : > { %807 = vmax.xlane.f32.xlu0 %v1718_v38 }
 0x1e2   : > { %v785_v39 = vpop.f32.mrf.mxu3 }
 0x1e3   : > { %v1737_v51 = vadd.f32 %v1345_v21, %v785_v39 }
 0x1e5   : > { %v773_v41 = vpop.f32.mrf.mxu2  ;;  %805 = vmax.xlane.f32.xlu2 %v1722_v40 }
 0x1e6   : > { %v1725_v42 = vadd.f32 %v1345_v21, %v773_v41 }
 0x1e8   : > { %809 = vmax.xlane.f32.xlu1 %v1725_v42 }
 0x1ea   : > { %v788_v43 = vpop.f32.mrf.mxu3 }
 0x1eb   : > { %v1743_v53 = vadd.f32 %v1345_v21, %v788_v43 }
 0x1ed   : > { %v775_v44 = vpop.f32.mrf.mxu2 }
 0x1ee   : > { %v1728_v45 = vadd.f32 %v1345_v21, %v775_v44 }
 0x1f0   : > { %811 = vmax.xlane.f32.xlu2 %v1728_v45 }
 0x1f2   : > { %v790_v46 = vpop.f32.mrf.mxu3 }
 0x1f3   : > { %v1731_v47 = vadd.f32 %v1345_v21, %v790_v46 }
 0x1f7   : > { %v778_v48 = vpop.f32.mrf.mxu2 }
 0x1f8   : > { %v1733_v49 = vadd.f32 %v1345_v21, %v778_v48  ;;  %823 = vmax.xlane.f32.xlu2 %v1731_v47 }
 0x1fa   : > { %813 = vmax.xlane.f32.xlu0 %v1733_v49 }
 0x1ff   : > { %v780_v50 = vpop.f32.mrf.mxu2 }
 0x200   : > { %v1739_v52 = vadd.f32 %v1345_v21, %v780_v50 }
 0x202   : > { %815 = vmax.xlane.f32.xlu1 %v1739_v52  ;;  %819 = vmax.xlane.f32.xlu0 %v1737_v51 }
 0x20a   : > { %821 = vmax.xlane.f32.xlu1 %v1743_v53 }
 0x21a   : > { %v794_v54 = vpop.xlane.xlu0 %793 }
 0x21b   : > { %v1746_v55 = vsub.f32 %v754_v23, %v794_v54 }
 0x21d   : > { %v841_v56 = vmul.f32 1.442695, %v1746_v55 }
 0x21f   : > { %1346 = vpow2.f32 %v841_v56 }
 0x222   : > { %v796_v57 = vpop.xlane.xlu1 %795 }
 0x223   : > { %v1749_v58 = vsub.f32 %v756_v25, %v796_v57 }
 0x225   : > { %v1347_v59 = vpop.eup %1346  ;;  %v843_v60 = vmul.f32 1.442695, %v1749_v58 }
 0x226   : > { %873 = vadd.xlane.f32.xlu0 %v1347_v59 }
 0x227   : > { %1348 = vpow2.f32 %v843_v60 }
 0x22a   : > { %v798_v61 = vpop.xlane.xlu2 %797 }
 0x22b   : > { %v1752_v62 = vsub.f32 %v759_v27, %v798_v61 }
 0x22d   : > { %v1349_v63 = vpop.eup %1348  ;;  %v845_v0 = vmul.f32 1.442695, %v1752_v62 }
 0x22e   : > { %875 = vadd.xlane.f32.xlu1 %v1349_v63 }
 0x22f   : > { %1350 = vpow2.f32 %v845_v0 }
 0x232   : > { %v800_v1 = vpop.xlane.xlu2 %799 }
 0x233   : > { %v1755_v2 = vsub.f32 %v761_v29, %v800_v1 }
 0x235   : > { %v1351_v3 = vpop.eup %1350  ;;  %v847_v4 = vmul.f32 1.442695, %v1755_v2 }
 0x236   : > { %877 = vadd.xlane.f32.xlu2 %v1351_v3 }
 0x237   : > { %1352 = vpow2.f32 %v847_v4 }
 0x23a   : > { %v802_v5 = vpop.xlane.xlu0 %801 }
 0x23b   : > { %v1758_v6 = vsub.f32 %v764_v31, %v802_v5 }
 0x23d   : > { %v1353_v7 = vpop.eup %1352  ;;  %v849_v8 = vmul.f32 1.442695, %v1758_v6 }
 0x23e   : > { %879 = vadd.xlane.f32.xlu0 %v1353_v7 }
 0x23f   : > { %1354 = vpow2.f32 %v849_v8 }
 0x242   : > { %v804_v9 = vpop.xlane.xlu1 %803 }
 0x243   : > { %v1761_v10 = vsub.f32 %v766_v33, %v804_v9 }
 0x245   : > { %v1355_v11 = vpop.eup %1354  ;;  %v851_v12 = vmul.f32 1.442695, %v1761_v10 }
 0x246   : > { %881 = vadd.xlane.f32.xlu1 %v1355_v11 }
 0x247   : > { %1356 = vpow2.f32 %v851_v12 }
 0x24d   : > { %v1357_v13 = vpop.eup %1356 }
 0x24e   : > { %883 = vadd.xlane.f32.xlu2 %v1357_v13 }
 0x250   : > { %v818_v14 = vpop.xlane.xlu2 %817 }
 0x251   : > { %v1765_v15 = vsub.f32 %v1716_v36, %v818_v14 }
 0x252   : > { %v808_v16 = vpop.xlane.xlu0 %807 }
 0x253   : > { %v865_v17 = vmul.f32 1.442695, %v1765_v15  ;;  %v1769_v18 = vsub.f32 %v1718_v38, %v808_v16 }
 0x255   : > { %1358 = vpow2.f32 %v865_v17  ;;  %v855_v19 = vmul.f32 1.442695, %v1769_v18 }
 0x257   : > { %1360 = vpow2.f32 %v855_v19 }
 0x258   : > { %v806_v20 = vpop.xlane.xlu2 %805 }
 0x259   : > { %v1773_v21 = vsub.f32 %v1722_v40, %v806_v20 }
 0x25b   : > { %v1359_v22 = vpop.eup %1358  ;;  %v853_v23 = vmul.f32 1.442695, %v1773_v21  ;;  %v810_v24 = vpop.xlane.xlu1 %809 }
 0x25c   : > { %v1777_v25 = vsub.f32 %v1725_v42, %v810_v24  ;;  %897 = vadd.xlane.f32.xlu0 %v1359_v22 }
 0x25d   : > { %v1361_v26 = vpop.eup %1360  ;;  %1362 = vpow2.f32 %v853_v23 }
 0x25e   : > { %v857_v27 = vmul.f32 1.442695, %v1777_v25  ;;  %887 = vadd.xlane.f32.xlu1 %v1361_v26 }
 0x260   : > { %1364 = vpow2.f32 %v857_v27 }
 0x263   : > { %v1363_v28 = vpop.eup %1362  ;;  %v812_v29 = vpop.xlane.xlu2 %811 }
 0x264   : > { %v1781_v30 = vsub.f32 %v1728_v45, %v812_v29  ;;  %885 = vadd.xlane.f32.xlu0 %v1363_v28 }
 0x266   : > { %v1365_v31 = vpop.eup %1364  ;;  %v859_v32 = vmul.f32 1.442695, %v1781_v30 }
 0x267   : > { %889 = vadd.xlane.f32.xlu2 %v1365_v31 }
 0x268   : > { %1366 = vpow2.f32 %v859_v32 }
 0x26b   : > { %v824_v33 = vpop.xlane.xlu2 %823 }
 0x26c   : > { %v1785_v34 = vsub.f32 %v1731_v47, %v824_v33 }
 0x26d   : > { %v814_v35 = vpop.xlane.xlu0 %813 }
 0x26e   : > { %v1367_v36 = vpop.eup %1366  ;;  %v871_v37 = vmul.f32 1.442695, %v1785_v34  ;;  %v1789_v38 = vsub.f32 %v1733_v49, %v814_v35 }
 0x26f   : > { %891 = vadd.xlane.f32.xlu0 %v1367_v36 }
 0x270   : > { %1368 = vpow2.f32 %v871_v37  ;;  %v861_v39 = vmul.f32 1.442695, %v1789_v38 }
 0x272   : > { %1370 = vpow2.f32 %v861_v39 }
 0x275   : > { %v816_v40 = vpop.xlane.xlu1 %815  ;;  %v820_v41 = vpop.xlane.xlu0 %819 }
 0x276   : > { %v1369_v42 = vpop.eup %1368  ;;  %v1793_v43 = vsub.f32 %v1739_v52, %v816_v40  ;;  %v1796_v44 = vsub.f32 %v1737_v51, %v820_v41 }
 0x277   : > { %903 = vadd.xlane.f32.xlu0 %v1369_v42 }
 0x278   : > { %v1371_v45 = vpop.eup %1370  ;;  %v863_v46 = vmul.f32 1.442695, %v1793_v43  ;;  %v867_v47 = vmul.f32 1.442695, %v1796_v44 }
 0x279   : > { %893 = vadd.xlane.f32.xlu1 %v1371_v45 }
 0x27a   : > { %1372 = vpow2.f32 %v863_v46 }
 0x27b   : > { %1374 = vpow2.f32 %v867_v47 }
 0x27d   : > { %v822_v48 = vpop.xlane.xlu1 %821 }
 0x27e   : > { %v1801_v49 = vsub.f32 %v1743_v53, %v822_v48 }
 0x280   : > { %v1373_v50 = vpop.eup %1372  ;;  %v869_v52 = vmul.f32 1.442695, %v1801_v49 }
 0x281   : > { %v1375_v51 = vpop.eup %1374  ;;  %895 = vadd.xlane.f32.xlu2 %v1373_v50 }
 0x282   : > { %1376 = vpow2.f32 %v869_v52  ;;  %899 = vadd.xlane.f32.xlu1 %v1375_v51 }
 0x288   : > { %v1377_v54 = vpop.eup %1376 }
 0x289   : > { %901 = vadd.xlane.f32.xlu2 %v1377_v54 }
 0x299   : > { %v874_v56 = vpop.xlane.xlu0 %873 }
 0x29a   : > { %1378 = vlog2.f32 %v874_v56 }
 0x2a0   : > { %v1379_v57 = vpop.eup %1378 }
 0x2a1   : > { %v906_v59 = vmul.f32 0.6931472, %v1379_v57  ;;  %v876_v60 = vpop.xlane.xlu1 %875 }
 0x2a2   : > { %1380 = vlog2.f32 %v876_v60 }
 0x2a3   : > { %v937_v53 = vsub.f32 %v1746_v55, %v906_v59 }
 0x2a5   : > { %953 = vst [vmem:[%s1808_s8] sm:$0xff] %v937_v53 }
 0x2a8   : > { %v1381_v61 = vpop.eup %1380 }
 0x2a9   : > { %v908_v63 = vmul.f32 0.6931472, %v1381_v61  ;;  %v878_v0 = vpop.xlane.xlu2 %877 }
 0x2aa   : > { %1382 = vlog2.f32 %v878_v0 }
 0x2ab   : > { %v938_v1 = vsub.f32 %v1749_v58, %v908_v63 }
 0x2ad   : > { %954 = vst [vmem:[%s1808_s8 + $0x8] sm:$0xff] %v938_v1 }
 0x2b0   : > { %v1383_v3 = vpop.eup %1382 }
 0x2b1   : > { %v910_v4 = vmul.f32 0.6931472, %v1383_v3  ;;  %v880_v5 = vpop.xlane.xlu0 %879 }
 0x2b2   : > { %1384 = vlog2.f32 %v880_v5 }
 0x2b3   : > { %v939_v55 = vsub.f32 %v1752_v62, %v910_v4 }
 0x2b5   : > { %955 = vst [vmem:[%s1808_s8 + $0x10] sm:$0xff] %v939_v55 }
 0x2b8   : > { %v1385_v7 = vpop.eup %1384 }
 0x2b9   : > { %v912_v8 = vmul.f32 0.6931472, %v1385_v7  ;;  %v882_v9 = vpop.xlane.xlu1 %881 }
 0x2ba   : > { %1386 = vlog2.f32 %v882_v9 }
 0x2bb   : > { %v940_v11 = vsub.f32 %v1755_v2, %v912_v8 }
 0x2bd   : > { %956 = vst [vmem:[%s1808_s8 + $0x18] sm:$0xff] %v940_v11 }
 0x2c0   : > { %v1387_v12 = vpop.eup %1386 }
 0x2c1   : > { %v914_v13 = vmul.f32 0.6931472, %v1387_v12  ;;  %v884_v58 = vpop.xlane.xlu2 %883 }
 0x2c2   : > { %1388 = vlog2.f32 %v884_v58 }
 0x2c3   : > { %v941_v14 = vsub.f32 %v1758_v6, %v914_v13 }
 0x2c5   : > { %957 = vst [vmem:[%s1808_s8 + $0x20] sm:$0xff] %v941_v14 }
 0x2c8   : > { %v1389_v16 = vpop.eup %1388 }
 0x2c9   : > { %v916_v17 = vmul.f32 0.6931472, %v1389_v16 }
 0x2cb   : > { %v942_v62 = vsub.f32 %v1761_v10, %v916_v17 }
 0x2cd   : > { %958 = vst [vmem:[%s1808_s8 + $0x28] sm:$0xff] %v942_v62 }
 0x2cf   : > { %v898_v19 = vpop.xlane.xlu0 %897 }
 0x2d0   : > { %1390 = vlog2.f32 %v898_v19 }
 0x2d1   : > { %v888_v20 = vpop.xlane.xlu1 %887 }
 0x2d2   : > { %1392 = vlog2.f32 %v888_v20 }
 0x2d6   : > { %v1391_v2 = vpop.eup %1390 }
 0x2d7   : > { %v930_v22 = vmul.f32 0.6931472, %v1391_v2  ;;  %v886_v23 = vpop.xlane.xlu0 %885 }
 0x2d8   : > { %v1393_v24 = vpop.eup %1392  ;;  %1394 = vlog2.f32 %v886_v23 }
 0x2d9   : > { %v949_v6 = vsub.f32 %v1765_v15, %v930_v22  ;;  %v920_v26 = vmul.f32 0.6931472, %v1393_v24 }
 0x2da   : > { %v890_v27 = vpop.xlane.xlu2 %889 }
 0x2db   : > { %965 = vst [vmem:[%s1808_s8 + $0x60] sm:$0xff] %v949_v6  ;;  %v944_v10 = vsub.f32 %v1769_v18, %v920_v26  ;;  %1396 = vlog2.f32 %v890_v27 }
 0x2dd   : > { %960 = vst [vmem:[%s1808_s8 + $0x38] sm:$0xff] %v944_v10 }
 0x2de   : > { %v1395_v28 = vpop.eup %1394 }
 0x2df   : > { %v918_v29 = vmul.f32 0.6931472, %v1395_v28 }
 0x2e1   : > { %v1397_v31 = vpop.eup %1396  ;;  %v943_v32 = vsub.f32 %v1773_v21, %v918_v29 }
 0x2e2   : > { %v922_v33 = vmul.f32 0.6931472, %v1397_v31  ;;  %v892_v35 = vpop.xlane.xlu0 %891 }
 0x2e3   : > { %959 = vst [vmem:[%s1808_s8 + $0x30] sm:$0xff] %v943_v32  ;;  %1398 = vlog2.f32 %v892_v35 }
 0x2e4   : > { %v945_v15 = vsub.f32 %v1777_v25, %v922_v33 }
 0x2e6   : > { %961 = vst [vmem:[%s1808_s8 + $0x40] sm:$0xff] %v945_v15 }
 0x2e9   : > { %v1399_v36 = vpop.eup %1398 }
 0x2ea   : > { %v924_v37 = vmul.f32 0.6931472, %v1399_v36  ;;  %v904_v39 = vpop.xlane.xlu0 %903 }
 0x2eb   : > { %1400 = vlog2.f32 %v904_v39 }
 0x2ec   : > { %v946_v18 = vsub.f32 %v1781_v30, %v924_v37  ;;  %v894_v40 = vpop.xlane.xlu1 %893 }
 0x2ed   : > { %1402 = vlog2.f32 %v894_v40 }
 0x2ee   : > { %962 = vst [vmem:[%s1808_s8 + $0x48] sm:$0xff] %v946_v18 }
 0x2f1   : > { %v1401_v41 = vpop.eup %1400 }
 0x2f2   : > { %v936_v21 = vmul.f32 0.6931472, %v1401_v41 }
 0x2f3   : > { %v1403_v42 = vpop.eup %1402 }
 0x2f4   : > { %v952_v45 = vsub.f32 %v1785_v34, %v936_v21  ;;  %v926_v46 = vmul.f32 0.6931472, %v1403_v42  ;;  %v896_v25 = vpop.xlane.xlu2 %895 }
 0x2f5   : > { %1404 = vlog2.f32 %v896_v25  ;;  %v900_v47 = vpop.xlane.xlu1 %899 }
 0x2f6   : > { %968 = vst [vmem:[%s1808_s8 + $0x78] sm:$0xff] %v952_v45  ;;  %v947_v48 = vsub.f32 %v1789_v38, %v926_v46  ;;  %1406 = vlog2.f32 %v900_v47 }
 0x2f8   : > { %963 = vst [vmem:[%s1808_s8 + $0x50] sm:$0xff] %v947_v48 }
 0x2fb   : > { %v1405_v30 = vpop.eup %1404 }
 0x2fc   : > { %v1407_v50 = vpop.eup %1406  ;;  %v928_v52 = vmul.f32 0.6931472, %v1405_v30  ;;  %v902_v51 = vpop.xlane.xlu2 %901 }
 0x2fd   : > { %v932_v34 = vmul.f32 0.6931472, %v1407_v50  ;;  %1408 = vlog2.f32 %v902_v51 }
 0x2fe   : > { %v948_v54 = vsub.f32 %v1793_v43, %v928_v52 }
 0x2ff   : > { %v950_v56 = vsub.f32 %v1796_v44, %v932_v34 }
 0x300   : > { %964 = vst [vmem:[%s1808_s8 + $0x58] sm:$0xff] %v948_v54 }
 0x301   : > { %966 = vst [vmem:[%s1808_s8 + $0x68] sm:$0xff] %v950_v56 }
 0x303   : > { %v1409_v38 = vpop.eup %1408 }
 0x304   : > { %v934_v57 = vmul.f32 0.6931472, %v1409_v38 }
 0x306   : > { %v951_v59 = vsub.f32 %v1801_v49, %v934_v57 }
 0x308   : > { %967 = vst [vmem:[%s1808_s8 + $0x70] sm:$0xff] %v951_v59 }
 0x309   : > { %1437 = shalt.err (!%p1434_p3)
}
 0x30a   : > { %s1477_s30 = smov 128   ;;  %s1478_s6 = smov 8  }
 0x30b   : > { %1284 = dma.vmem_to_hbm [thread:$0]  (%p1542_p5), %s983_s13, 2048, %s985_s14, %s970_s19, %s1477_s30, %s1477_s30, %s1478_s6  }
 0x30c PF: > { %p1290_p4 = scmp.ge.s32.totalorder %s1472_s18, 2  ;;  %s999_s7 = sand.u32 1, %s1460_s15  }
 0x30d   : > { %s1000_s8 = scalar_lea.sflag [#allocation3], %s999_s7 }
 0x30e   : > { %p1287_p7 = pnand %p1290_p4, %p1546_p6 }
 0x310   : > { %p1288_p8 = pneg %p1287_p7 }
 0x312   : > { %1455 = dma.done.wait (%p1288_p8), %s1000_s8, 2048  }
 0x313   : > { %1457 = vsyncadd (%p1288_p8), %s1000_s8, 4294965248  ;;  %p14_p9 = scmp.ge.s32.totalorder %s1529_s21, 4   ;;  %s1882_s15 = smov %s1464_s16 }
 0x314   : > { %s1883_s16 = smov %s1468_s17  ;;  %s1884_s17 = smov %s1540_s24 }
 0x315   : > { %s1885_s18 = smov %s1529_s21  ;;  %16 = sbr.rel (!%p14_p9) target bundleno = 3 (0x3), region = 72 }
 0x31a   :  { %1006 = vsyncpa [#allocation3], 1 }
 0x31b   :  { %1008 = vsyncpa [#allocation3 + $0x1], 1 }

</bundles_post_ra>
